<compile_context>
chip_gen: v6e
topology: v6e:2x2x1
jax: 0.10.0
libtpu: 0.0.40
codegen_flags: <defaults>
</compile_context>

<pallas_src>
import functools
import math

import jax
import jax.numpy as jnp
from jax.experimental import pallas as pl
from jax.experimental.pallas import tpu as pltpu


def _layernorm_kernel(x_ref, w_ref, b_ref, o_ref, *, eps):
    # x_ref: (tile_rows, hidden); w_ref / b_ref: (1, hidden), already f32.
    x = x_ref[...].astype(jnp.float32)
    # Two-pass row statistics (numerically safer than E[x^2] - E[x]^2); the
    # (x - u)^2 term fuses into the reduction, so no extra full-tile temp.
    u = jnp.mean(x, axis=-1, keepdims=True)
    s = jnp.mean(jnp.square(x - u), axis=-1, keepdims=True)
    r = jax.lax.rsqrt(s + eps)                       # EUP slot, ~free
    # Single fused output pass; only `x` remains live as a full-size f32 value.
    # NOTE: on a masked partial last block the OOB rows hold undefined data and
    # may produce NaN/Inf here; that is fine because OOB writes are dropped and
    # every computation is strictly per-row (keep test 2 covering this).
    o_ref[...] = ((x - u) * r * w_ref[...] + b_ref[...]).astype(o_ref.dtype)


def _vmem_capacity_bytes():
    try:
        return int(pltpu.get_tpu_info().vmem_capacity_bytes)
    except Exception:
        return 64 << 20        # conservative fallback (v7x per-core VMEM)


def _is_two_tensorcore_chip():
    # v7x has 2 TensorCores per chip; v5e/v6e have 1.
    try:
        return "7" in jax.devices()[0].device_kind
    except Exception:
        return False


def _vmem_budget_bytes(vmem_cap):
    if vmem_cap >= (96 << 20):
        # v5e/v6e: 128 MiB physical VMEM; the 16/32 MiB scoped default is not
        # a hard ceiling, so use a generous working-set budget.
        return 56 << 20
    # v7x: 64 MiB physical per core; leave headroom for compiler scratch.
    return min(40 << 20, max(12 << 20, vmem_cap - (24 << 20)))


def _pick_tile_rows(rows, hidden, itemsize, align, vmem_budget_bytes,
                    max_tile_rows, two_tensorcores):
    """Largest aligned row tile whose pipelined working set fits the budget."""
    # Per-row footprint: 2x double-buffered input block + 2x double-buffered
    # output block (input dtype) + ~2 f32 words/elem of temporaries (the
    # upcast x plus transient values in the fused output pass).
    per_row = hidden * (4 * itemsize + 8)
    t = max(align, (vmem_budget_bytes // per_row) // align * align)
    t = min(t, max_tile_rows)
    if t >= rows:
        # Whole problem fits in one block.
        if two_tensorcores and rows >= 4 * align:
            # Give each TensorCore >=2 grid steps so BlockSpec double-buffering
            # can overlap DMA with compute on both v7x cores.
            quarter = pl.cdiv(rows, 4)
            t = ((quarter + align - 1) // align) * align
        else:
            # 1-TC chip (or tiny problem): single full-extent block, no extra
            # grid-step overhead.
            t = rows
    return int(t)


def bert_layer_norm(x, weight, bias, eps=1e-12, tile_rows=None):
    """TF-style LayerNorm. x: (..., hidden); weight, bias: (hidden,)."""
    orig_shape = x.shape
    hidden = orig_shape[-1]
    rows = int(math.prod(orig_shape[:-1])) if len(orig_shape) > 1 else 1
    x2 = x.reshape(rows, hidden)

    # Hoist the param upcast out of the kernel; the (1, hidden) blocks stay
    # VMEM-resident thanks to the constant (0, 0) index_map.
    w2 = weight.astype(jnp.float32).reshape(1, hidden)
    b2 = bias.astype(jnp.float32).reshape(1, hidden)

    itemsize = jnp.dtype(x.dtype).itemsize
    align = {4: 8, 2: 16, 1: 32}.get(itemsize, 8)       # sublane packing

    vmem_cap = _vmem_capacity_bytes()
    budget = _vmem_budget_bytes(vmem_cap)

    if tile_rows is None:
        # Size steps so each moves >= ~8 MiB of HBM traffic (in + out) to
        # amortize the ~0.35 us per-step pipeline overhead; cap at 8192 rows.
        hbm_bytes_per_row = max(1, 2 * hidden * itemsize)
        rows_for_target = -(-(8 << 20) // hbm_bytes_per_row)
        max_tile_rows = int(min(
            8192,
            max(1024, ((rows_for_target + align - 1) // align) * align)))
        tile_rows = _pick_tile_rows(rows, hidden, itemsize, align, budget,
                                    max_tile_rows, _is_two_tensorcore_chip())
    tile_rows = min(tile_rows, rows)

    grid = (pl.cdiv(rows, tile_rows),)     # partial last block is masked

    # Explicit VMEM limit derived from the actual working set (+ headroom),
    # never exceeding physical capacity.
    block_bytes = tile_rows * hidden * itemsize
    params_bytes = 2 * 2 * hidden * 4
    temps_bytes = tile_rows * hidden * 8
    vmem_limit = 4 * block_bytes + temps_bytes + params_bytes + (8 << 20)
    vmem_limit = int(min(max(vmem_limit, 16 << 20),
                         max(vmem_cap - (4 << 20), 16 << 20)))

    out = pl.pallas_call(
        functools.partial(_layernorm_kernel, eps=float(eps)),
        out_shape=jax.ShapeDtypeStruct((rows, hidden), x.dtype),
        grid_spec=pltpu.PrefetchScalarGridSpec(
            num_scalar_prefetch=0,
            grid=grid,
            in_specs=[
                # TODO(synk): sweep pipeline_mode=pl.Buffered(3) on this spec
                # on v7x if xprof still shows exposed input DMA at these tiles.
                pl.BlockSpec((tile_rows, hidden), lambda i: (i, 0)),
                pl.BlockSpec((1, hidden), lambda i: (0, 0)),
                pl.BlockSpec((1, hidden), lambda i: (0, 0)),
            ],
            out_specs=pl.BlockSpec((tile_rows, hidden), lambda i: (i, 0)),
        ),
        compiler_params=pltpu.CompilerParams(
            dimension_semantics=("parallel",),
            vmem_limit_bytes=vmem_limit),
    )(x2, w2, b2)

    # TODO(synk): hidden not a multiple of 128 leaves lanes partially masked;
    # real BERT hidden sizes (768/1024/4096) are lane-dense already.
    return out.reshape(orig_shape)


def _reference(x, weight, bias, eps):
    u = jnp.mean(x, axis=-1, keepdims=True)
    s = jnp.mean((x - u) ** 2, axis=-1, keepdims=True)
    return weight * ((x - u) / jnp.sqrt(s + eps)) + bias


if __name__ == "__main__":
    key = jax.random.PRNGKey(0)

    # Test 1: small shape consistent with the module (batch=2, seq=8, hidden=32),
    # exercising the "whole problem fits one block" path.
    batch, seq, hidden = 2, 8, 32
    k1, k2 = jax.random.split(key)
    x = jax.random.normal(k1, (batch, seq, hidden), dtype=jnp.float32)
    weight = jnp.ones((hidden,), dtype=jnp.float32)
    bias = jnp.zeros((hidden,), dtype=jnp.float32)

    y = bert_layer_norm(x, weight, bias, eps=1e-12)
    y = jax.block_until_ready(y)
    ref = _reference(x, weight, bias, 1e-12)
    assert jnp.allclose(y, ref, atol=1e-5, rtol=1e-5), "mismatch vs reference (test 1)"

    # Test 2: rows (3*17=51) not a multiple of the forced tile (16) -> exercises
    # the masked partial last block, lane-dense hidden=128, non-trivial params.
    b2_, s2_, h2_ = 3, 17, 128
    ka, kb, kc = jax.random.split(k2, 3)
    x2 = jax.random.normal(ka, (b2_, s2_, h2_), dtype=jnp.float32)
    w2 = 1.0 + 0.1 * jax.random.normal(kb, (h2_,), dtype=jnp.float32)
    bb2 = 0.1 * jax.random.normal(kc, (h2_,), dtype=jnp.float32)

    y2 = bert_layer_norm(x2, w2, bb2, eps=1e-12, tile_rows=16)
    y2 = jax.block_until_ready(y2)
    ref2 = _reference(x2, w2, bb2, 1e-12)
    assert jnp.allclose(y2, ref2, atol=1e-5, rtol=1e-5), "mismatch vs reference (test 2)"

    print("KERNEL_OK")
</pallas_src>

<mosaic_0001>
module attributes {stable_mosaic.version = 11 : i64} {
  func.func @_layernorm_kernel(%arg0: i32, %arg1: memref<16x32xf32, #tpu.memory_space<vmem>>, %arg2: memref<1x32xf32, #tpu.memory_space<vmem>>, %arg3: memref<1x32xf32, #tpu.memory_space<vmem>>, %arg4: memref<16x32xf32, #tpu.memory_space<vmem>>) attributes {dimension_semantics = [#tpu.dimension_semantics<parallel>], iteration_bounds = array<i64: 1>, scalar_prefetch = 0 : i64, scratch_operands = 0 : i64, tpu.core_type = #tpu.core_type<tc>, window_params = [{transform_indices = @transform_0, window_bounds = array<i64: 16, 32>}, {pipeline_mode = #tpu.pipeline_mode<synchronous>, transform_indices = @transform_1, window_bounds = array<i64: 1, 32>}, {pipeline_mode = #tpu.pipeline_mode<synchronous>, transform_indices = @transform_2, window_bounds = array<i64: 1, 32>}, {transform_indices = @transform_3, window_bounds = array<i64: 16, 32>}]} {
    %c0 = arith.constant 0 : index
    %c0_0 = arith.constant 0 : index
    %0 = vector.load %arg1[%c0, %c0_0] : memref<16x32xf32, #tpu.memory_space<vmem>>, vector<16x32xf32>
    %cst = arith.constant dense<0.000000e+00> : vector<16xf32>
    %1 = vector.multi_reduction <add>, %0, %cst [1] : vector<16x32xf32> to vector<16xf32>
    %2 = vector.shape_cast %1 : vector<16xf32> to vector<16x1xf32>
    %cst_1 = arith.constant 3.200000e+01 : f32
    %3 = vector.broadcast %cst_1 : f32 to vector<16x1xf32>
    %4 = arith.divf %2, %3 : vector<16x1xf32>
    %5 = vector.broadcast %4 : vector<16x1xf32> to vector<16x32xf32>
    %6 = arith.subf %0, %5 : vector<16x32xf32>
    %7 = arith.mulf %6, %6 : vector<16x32xf32>
    %cst_2 = arith.constant dense<0.000000e+00> : vector<16xf32>
    %8 = vector.multi_reduction <add>, %7, %cst_2 [1] : vector<16x32xf32> to vector<16xf32>
    %9 = vector.shape_cast %8 : vector<16xf32> to vector<16x1xf32>
    %cst_3 = arith.constant 3.200000e+01 : f32
    %10 = vector.broadcast %cst_3 : f32 to vector<16x1xf32>
    %11 = arith.divf %9, %10 : vector<16x1xf32>
    %cst_4 = arith.constant 9.99999996E-13 : f32
    %12 = vector.broadcast %cst_4 : f32 to vector<16x1xf32>
    %13 = arith.addf %11, %12 : vector<16x1xf32>
    %14 = math.rsqrt %13 : vector<16x1xf32>
    %15 = vector.broadcast %4 : vector<16x1xf32> to vector<16x32xf32>
    %16 = arith.subf %0, %15 : vector<16x32xf32>
    %17 = vector.broadcast %14 : vector<16x1xf32> to vector<16x32xf32>
    %18 = arith.mulf %16, %17 : vector<16x32xf32>
    %c0_5 = arith.constant 0 : index
    %c0_6 = arith.constant 0 : index
    %19 = vector.load %arg2[%c0_5, %c0_6] : memref<1x32xf32, #tpu.memory_space<vmem>>, vector<1x32xf32>
    %20 = vector.broadcast %19 : vector<1x32xf32> to vector<16x32xf32>
    %21 = arith.mulf %18, %20 : vector<16x32xf32>
    %c0_7 = arith.constant 0 : index
    %c0_8 = arith.constant 0 : index
    %22 = vector.load %arg3[%c0_7, %c0_8] : memref<1x32xf32, #tpu.memory_space<vmem>>, vector<1x32xf32>
    %23 = vector.broadcast %22 : vector<1x32xf32> to vector<16x32xf32>
    %24 = arith.addf %21, %23 : vector<16x32xf32>
    %c0_9 = arith.constant 0 : index
    %c0_10 = arith.constant 0 : index
    %25 = vector.load %arg4[%c0_9, %c0_10] : memref<16x32xf32, #tpu.memory_space<vmem>>, vector<16x32xf32>
    tpu.vector_store %arg4[%c0_9, %c0_10], %24 {strides = array<i32>} : memref<16x32xf32, #tpu.memory_space<vmem>>, vector<16x32xf32>,
    return
  }
  func.func @transform_0(%arg0: i32) -> (i32, i32) {
    %c0_i32 = arith.constant 0 : i32
    %c0_i32_0 = arith.constant 0 : i32
    return %arg0, %c0_i32 : i32, i32
  }
  func.func @transform_1(%arg0: i32) -> (i32, i32) {
    %c0_i32 = arith.constant 0 : i32
    %c0_i32_0 = arith.constant 0 : i32
    %c0_i32_1 = arith.constant 0 : i32
    return %c0_i32, %c0_i32_0 : i32, i32
  }
  func.func @transform_2(%arg0: i32) -> (i32, i32) {
    %c0_i32 = arith.constant 0 : i32
    %c0_i32_0 = arith.constant 0 : i32
    %c0_i32_1 = arith.constant 0 : i32
    return %c0_i32, %c0_i32_0 : i32, i32
  }
  func.func @transform_3(%arg0: i32) -> (i32, i32) {
    %c0_i32 = arith.constant 0 : i32
    %c0_i32_0 = arith.constant 0 : i32
    return %arg0, %c0_i32 : i32, i32
  }
}

</mosaic_0001>

<bundles_post_ra>
// kernel: tpu_custom_call.1
= control target key start
LH: loop header
LB: loop body
LE: loop exit
PB: predicated region body
PF: predicated region fallthrough
CT: control target
= control target key end

     0   :  { %8 = vsyncpa [#allocation3], 0  ;;  %s198_s0 = inlined_call_operand.hbm [shape: f32[16,32], index: 0, kind: input, shape index: {}]   ;;  %s199_s1 = inlined_call_operand.vmem [shape: f32[1,32], index: 1, kind: input, shape index: {}]   ;;  %s200_s2 = inlined_call_operand.vmem [shape: f32[1,32], index: 2, kind: input, shape index: {}]   ;;  %s201_s3 = inlined_call_operand.hbm [shape: f32[16,32], index: 3, kind: output, shape index: {}]  }
   0x1   :  { %9 = vsyncpa [#allocation4], 0  ;;  %s150_s12 = smov [#allocation2]  }
   0x2   :  { %s15_s13 = sshll.u32 %s150_s12, 4  ;;  %s16_s13 = int_to_ptr.vmem [resolvable:$true] %s15_s13 }
   0x3   :  { %s114_s14 = scalar_lea.vmem %s16_s13, 256  ;;  %p119_p1 = scmp.lt.s32.totalorder %s16_s13, %s16_s13 }
   0x4   :  { %p115_p0 = scmp.ne.s32.totalorder %s16_s13, %s114_s14  ;;  %p120_p2 = scmp.lt.s32.totalorder %s114_s14, %s114_s14 }
   0x6   :  { %p121_p3 = por %p120_p2, %p119_p1 }
   0x8   :  { %p122_p4 = pnand %p121_p3, %p115_p0 }
   0xa   :  { %125 = shalt.err (!%p122_p4)
}
   0xb   :  { %s151_s15 = smov 128   ;;  %s152_s16 = smov 8  }
   0xc   :  { %21 = dma.hbm_to_vmem [thread:$0]  %s198_s0, 256, %s16_s13, [#allocation3], %s151_s15, %s151_s15, %s152_s16  }
   0xd   :  { %146 = dma.done.wait [#allocation3], 256  }
   0xe   :  { %147 = vsyncadd [#allocation3], 4294967040  ;;  %vm31_vm0 = vcmask 261120   ;;  %v29_v0 = vld [vmem:[#allocation2] sm:$0xff]  ;;  %v30_v1 = vld [vmem:[#allocation2 + $0x8] sm:$0xff]  ;;  %s153_s22 = smov [#allocation5]  }
   0xf   :  { %v32_v2 = vsel %vm31_vm0, %v29_v0, 0.0  ;;  %v35_v3 = vsel %vm31_vm0, %v30_v1, 0.0  ;;  %v96_v21 = vld [vmem:[%s199_s1] ss:$0 sm:$0xff]  ;;  %s84_s23 = sshll.u32 %s153_s22, 4  ;;  %s85_s23 = int_to_ptr.vmem [resolvable:$true] %s84_s23 }
  0x10   :  { %33 = vadd.xlane.f32.xlu0 %v32_v2  ;;  %v97_v23 = vld [vmem:[%s200_s2] ss:$0 sm:$0xff]  ;;  %s126_s24 = scalar_lea.vmem %s85_s23, 256  ;;  %p131_p6 = scmp.lt.s32.totalorder %s85_s23, %s85_s23 }
  0x11   :  { %p127_p5 = scmp.ne.s32.totalorder %s85_s23, %s126_s24  ;;  %p132_p7 = scmp.lt.s32.totalorder %s126_s24, %s126_s24 }
  0x13   :  { %p133_p8 = por %p132_p7, %p131_p6 }
  0x14   :  { %36 = vadd.xlane.f32.xlu0 %v35_v3 }
  0x15   :  { %p134_p9 = pnand %p133_p8, %p127_p5 }
  0x99   :  { %v34_v4 = vpop.xlane.xlu0 %33 }
  0x9a   :  { %v39_v5 = vmul.f32 0.03125, %v34_v4 }
  0x9c   :  { %v41_v6 = vsub.f32 %v29_v0, %v39_v5 }
  0x9d   :  { %v37_v7 = vpop.xlane.xlu0 %36 }
  0x9e   :  { %v40_v8 = vmul.f32 0.03125, %v37_v7  ;;  %v43_v9 = vmul.f32 %v41_v6, %v41_v6 }
  0xa0   :  { %v42_v10 = vsub.f32 %v30_v1, %v40_v8  ;;  %v45_v11 = vsel %vm31_vm0, %v43_v9, 0.0 }
  0xa1   :  { %46 = vadd.xlane.f32.xlu1 %v45_v11 }
  0xa2   :  { %v44_v12 = vmul.f32 %v42_v10, %v42_v10 }
  0xa4   :  { %v48_v13 = vsel %vm31_vm0, %v44_v12, 0.0 }
  0xa5   :  { %49 = vadd.xlane.f32.xlu1 %v48_v13 }
 0x12a   :  { %v47_v14 = vpop.xlane.xlu1 %46 }
 0x12b   :  { %v51_v15 = vmul.f32 0.03125, %v47_v14 }
 0x12d   :  { %v53_v16 = vadd.f32 1e-12, %v51_v15 }
 0x12e   :  { %v50_v17 = vpop.xlane.xlu1 %49 }
 0x12f   :  { %102 = vrsqrt.f32 %v53_v16  ;;  %v52_v18 = vmul.f32 0.03125, %v50_v17 }
 0x131   :  { %v54_v19 = vadd.f32 1e-12, %v52_v18 }
 0x133   :  { %104 = vrsqrt.f32 %v54_v19 }
 0x13c   :  { %v103_v20 = vpop.eup %102 }
 0x13d   :  { %v57_v22 = vmul.f32 %v103_v20, %v41_v6 }
 0x13f   :  { %v66_v24 = vmul.f32 %v96_v21, %v57_v22 }
 0x140   :  { %v105_v25 = vpop.eup %104 }
 0x141   :  { %v58_v26 = vmul.f32 %v105_v25, %v42_v10  ;;  %v75_v27 = vadd.f32 %v97_v23, %v66_v24 }
 0x143   :  { %v67_v28 = vmul.f32 %v96_v21, %v58_v26  ;;  %77 = vst.msk [vmem:[#allocation5] sm:$0xff] %vm31_vm0, %v75_v27 }
 0x145   :  { %v76_v29 = vadd.f32 %v97_v23, %v67_v28 }
 0x147   :  { %78 = vst.msk [vmem:[#allocation5 + $0x8] sm:$0xff] %vm31_vm0, %v76_v29 }
 0x148   :  { %137 = shalt.err (!%p134_p9)
}
 0x149   :  { %90 = dma.vmem_to_hbm [thread:$0]  %s85_s23, 256, %s201_s3, [#allocation4], %s151_s15, %s151_s15, %s152_s16  }
 0x14a   :  { %148 = dma.done.wait [#allocation4], 256  }
 0x14b   :  { %149 = vsyncadd [#allocation4], 4294967040 }
 0x14c   :  { %94 = vsyncpa [#allocation3], 1 }
 0x14d   :  { %95 = vsyncpa [#allocation4], 1 }

</bundles_post_ra>
